<compile_context>
chip_gen: v6e
topology: v6e:2x2x1
jax: 0.10.0
libtpu: 0.0.40
codegen_flags: <defaults>
</compile_context>

<pallas_src>
import math

import jax
import jax.numpy as jnp
from jax.experimental import pallas as pl
from jax.experimental.pallas import tpu as pltpu


# ------------------------------ Pallas kernel -------------------------------

def _mlp_kernel(x_ref, *refs):
    """Fused MLP: x -> [Linear (+ReLU)] * (L-1) -> Linear.

    refs = (w1, ..., wL, bias_stack, out).
      w_i        : (K_i, N_i) bf16, pre-transposed -> lane-dense MXU RHS
      bias_stack : (round_up(L, 8), N_max) f32
    All matmuls accumulate in f32; bias + ReLU are f32 epilogues; the
    activation is re-cast to bf16 only as the next layer's MXU LHS.
    """
    *w_refs, b_ref, o_ref = refs
    num_layers = len(w_refs)
    b_all = b_ref[...]                       # tiny (L_pad, N_max) f32
    h = x_ref[...]                           # (row_block, K) bf16
    for i in range(num_layers):
        w = w_refs[i][...]                   # (K_i, N_i) bf16
        n_i = w.shape[1]
        acc = jnp.dot(h, w, preferred_element_type=jnp.float32)
        acc = acc + b_all[i, :n_i]           # f32 bias epilogue
        if i < num_layers - 1:
            h = jnp.maximum(acc, 0.0).astype(jnp.bfloat16)   # fused ReLU
        else:
            h = acc
    o_ref[...] = h.astype(o_ref.dtype)


# ------------------------------ helpers --------------------------------------

def _round_up(v, m):
    return ((v + m - 1) // m) * m


def _choose_row_block(m):
    """Row tile: single step for tiny M; >=2 steps (v7x megacore) otherwise."""
    m8 = _round_up(m, 8)
    if m8 <= 64:
        return m8                            # latency-bound: one full-M block
    # At least 2 grid steps so ("parallel",) can use both v7x TensorCores;
    # cap at 512 (>= ~85% of HBM roofline, comfortably inside scoped VMEM).
    return min(512, _round_up((m8 + 1) // 2, 8))


# ------------------------------ pallas wrapper --------------------------------

def pallas_mlp_2d(x2d_bf16, weights_bf16, bias_stack, row_block):
    """x2d_bf16: (M, K) bf16 with M a multiple of row_block."""
    M, K = x2d_bf16.shape
    n_out = weights_bf16[-1].shape[1]
    grid = (M // row_block,)

    in_specs = [pl.BlockSpec((row_block, K), lambda i: (i, 0))]
    for w in weights_bf16:
        in_specs.append(pl.BlockSpec(w.shape, lambda i: (0, 0)))     # resident
    in_specs.append(pl.BlockSpec(bias_stack.shape, lambda i: (0, 0)))

    w_bytes = sum(int(w.size) * 2 for w in weights_bf16)
    flops = 2 * M * sum(int(w.shape[0]) * int(w.shape[1]) for w in weights_bf16)
    bytes_accessed = (int(x2d_bf16.size) * 2 + w_bytes
                      + int(bias_stack.size) * 4 + M * n_out * 4)

    # Scoped-VMEM estimate: double-buffered x/out tiles + (double-buffered)
    # resident weights + biases.  Only raise the limit when it matters.
    vmem_est = (2 * row_block * K * 2 + 2 * row_block * n_out * 4
                + 2 * w_bytes + 2 * int(bias_stack.size) * 4)
    vmem_limit = None
    if vmem_est > 30 * 1024 * 1024:
        vmem_limit = min(int(vmem_est * 1.25), 100 * 1024 * 1024)

    return pl.pallas_call(
        _mlp_kernel,
        out_shape=jax.ShapeDtypeStruct((M, n_out), jnp.float32),
        grid=grid,
        in_specs=in_specs,
        out_specs=pl.BlockSpec((row_block, n_out), lambda i: (i, 0)),
        compiler_params=pltpu.CompilerParams(
            dimension_semantics=("parallel",),
            vmem_limit_bytes=vmem_limit),
        cost_estimate=pl.CostEstimate(
            flops=flops, transcendentals=0, bytes_accessed=bytes_accessed),
    )(x2d_bf16, *weights_bf16, bias_stack)


# ------------------------------ JAX-facing API --------------------------------

def prepare_mlp_params(params):
    """One-time staging of nn.Linear-style params.

    params: list of (weight (out_dim, in_dim) f32, bias (out_dim,) f32).
    Returns:
      weights_bf16: tuple of (in_dim, out_dim) bf16  (transposed + cast once)
      bias_stack  : (round_up(L, 8), N_max) f32      (sublane-padded stack)
    """
    weights_bf16 = tuple(jnp.asarray(w, jnp.float32).T.astype(jnp.bfloat16)
                         for w, _ in params)
    n_max = max(int(b.shape[0]) for _, b in params)
    l_pad = _round_up(len(params), 8)
    rows = [jnp.pad(jnp.asarray(b, jnp.float32), (0, n_max - b.shape[0]))
            for _, b in params]
    rows += [jnp.zeros((n_max,), jnp.float32)] * (l_pad - len(params))
    bias_stack = jnp.stack(rows, axis=0)
    return weights_bf16, bias_stack


def mlp_forward(x, weights_bf16, bias_stack):
    """PyTorch-style MLP.forward: any leading dims, feature dim last."""
    lead = x.shape[:-1]
    x2d = x.reshape(-1, x.shape[-1])
    m = x2d.shape[0]
    row_block = _choose_row_block(m)
    m_pad = _round_up(m, row_block)
    if m_pad != m:
        x2d = jnp.pad(x2d, ((0, m_pad - m), (0, 0)))   # zero rows, sliced off
    y2d = pallas_mlp_2d(x2d.astype(jnp.bfloat16), tuple(weights_bf16),
                        bias_stack, row_block)
    return y2d[:m].reshape(*lead, y2d.shape[-1])


def mlp_reference(x, params):
    """Pure-JAX f32 reference matching the PyTorch module semantics."""
    h = x
    n = len(params)
    for i, (w, b) in enumerate(params):
        h = h @ w.T + b
        if i < n - 1:
            h = jax.nn.relu(h)
    return h


# ------------------------------ parameter init --------------------------------

def init_mlp_params(key, input_dim, hidden_dim, output_dim, num_layers):
    """nn.Linear-style init; weights in PyTorch (out_dim, in_dim) convention."""
    h = [hidden_dim] * (num_layers - 1)
    dims = list(zip([input_dim] + h, h + [output_dim]))
    keys = jax.random.split(key, len(dims))
    params = []
    for k, (n_in, n_out) in zip(keys, dims):
        k1, k2 = jax.random.split(k)
        bound = 1.0 / math.sqrt(n_in)
        w = jax.random.uniform(k1, (n_out, n_in), jnp.float32, -bound, bound)
        b = jax.random.uniform(k2, (n_out,), jnp.float32, -bound, bound)
        params.append((w, b))
    return params


# ----------------------------------- main --------------------------------------

if __name__ == "__main__":
    key = jax.random.PRNGKey(0)
    kp, kx = jax.random.split(key)

    # Small shapes consistent with how this MLP is used in the decoder
    # (e.g. query_scale = MLP(d_model, d_model, d_model, num_layers) applied to
    # (num_queries, batch, d_model) activations).
    input_dim, hidden_dim, output_dim, num_layers = 256, 256, 256, 3
    nq, bs = 8, 2

    params = init_mlp_params(kp, input_dim, hidden_dim, output_dim, num_layers)
    weights_bf16, bias_stack = prepare_mlp_params(params)   # staged once
    x = jax.random.normal(kx, (nq, bs, input_dim), jnp.float32)

    fwd = jax.jit(mlp_forward)
    out = jax.block_until_ready(fwd(x, weights_bf16, bias_stack))

    assert out.shape == (nq, bs, output_dim), out.shape
    assert bool(jnp.all(jnp.isfinite(out)))

    # Tolerance reflects the explicit bf16-MXU / f32-accumulation choice
    # (~1e-2 relative for 256-deep dot products vs. the all-f32 reference).
    ref = mlp_reference(x, params)
    max_err = float(jnp.max(jnp.abs(out - ref)))
    assert bool(jnp.allclose(out, ref, atol=3e-2, rtol=3e-2)), max_err

    print("KERNEL_OK")
</pallas_src>

<mosaic_0001>
module attributes {stable_mosaic.version = 11 : i64} {
  func.func @_mlp_kernel(%arg0: i32, %arg1: memref<16x256xbf16, #tpu.memory_space<vmem>>, %arg2: memref<256x256xbf16, #tpu.memory_space<vmem>>, %arg3: memref<256x256xbf16, #tpu.memory_space<vmem>>, %arg4: memref<256x256xbf16, #tpu.memory_space<vmem>>, %arg5: memref<8x256xf32, #tpu.memory_space<vmem>>, %arg6: memref<16x256xf32, #tpu.memory_space<vmem>>) attributes {dimension_semantics = [#tpu.dimension_semantics<parallel>], iteration_bounds = array<i64: 1>, scalar_prefetch = 0 : i64, scratch_operands = 0 : i64, tpu.core_type = #tpu.core_type<tc>, window_params = [{transform_indices = @transform_0, window_bounds = array<i64: 16, 256>}, {pipeline_mode = #tpu.pipeline_mode<synchronous>, transform_indices = @transform_1, window_bounds = array<i64: 256, 256>}, {pipeline_mode = #tpu.pipeline_mode<synchronous>, transform_indices = @transform_2, window_bounds = array<i64: 256, 256>}, {pipeline_mode = #tpu.pipeline_mode<synchronous>, transform_indices = @transform_3, window_bounds = array<i64: 256, 256>}, {pipeline_mode = #tpu.pipeline_mode<synchronous>, transform_indices = @transform_4, window_bounds = array<i64: 8, 256>}, {transform_indices = @transform_5, window_bounds = array<i64: 16, 256>}]} {
    %c0 = arith.constant 0 : index
    %c0_0 = arith.constant 0 : index
    %0 = vector.load %arg5[%c0, %c0_0] : memref<8x256xf32, #tpu.memory_space<vmem>>, vector<8x256xf32>
    %c0_1 = arith.constant 0 : index
    %c0_2 = arith.constant 0 : index
    %1 = vector.load %arg1[%c0_1, %c0_2] : memref<16x256xbf16, #tpu.memory_space<vmem>>, vector<16x256xbf16>
    %c0_3 = arith.constant 0 : index
    %c0_4 = arith.constant 0 : index
    %2 = vector.load %arg2[%c0_3, %c0_4] : memref<256x256xbf16, #tpu.memory_space<vmem>>, vector<256x256xbf16>
    %cst = arith.constant dense<0.000000e+00> : vector<16x256xf32>
    %3 = tpu.matmul %1, %2, %cst {dimension_numbers = #tpu.dot_dimension_numbers<[1], [0], [0], [1], [0, 0, 1, 1], [], []>} : vector<16x256xbf16>, vector<256x256xbf16>, vector<16x256xf32> -> vector<16x256xf32>
    %4 = vector.extract_strided_slice %0 {offsets = [0, 0], sizes = [1, 256], strides = [1, 1]} : vector<8x256xf32> to vector<1x256xf32>
    %5 = vector.shape_cast %4 : vector<1x256xf32> to vector<256xf32>
    %6 = vector.shape_cast %5 : vector<256xf32> to vector<1x256xf32>
    %7 = vector.broadcast %6 : vector<1x256xf32> to vector<16x256xf32>
    %8 = arith.addf %3, %7 : vector<16x256xf32>
    %cst_5 = arith.constant 0.000000e+00 : f32
    %9 = vector.broadcast %cst_5 : f32 to vector<16x256xf32>
    %10 = arith.maximumf %8, %9 : vector<16x256xf32>
    %11 = arith.truncf %10 : vector<16x256xf32> to vector<16x256xbf16>
    %c0_6 = arith.constant 0 : index
    %c0_7 = arith.constant 0 : index
    %12 = vector.load %arg3[%c0_6, %c0_7] : memref<256x256xbf16, #tpu.memory_space<vmem>>, vector<256x256xbf16>
    %cst_8 = arith.constant dense<0.000000e+00> : vector<16x256xf32>
    %13 = tpu.matmul %11, %12, %cst_8 {dimension_numbers = #tpu.dot_dimension_numbers<[1], [0], [0], [1], [0, 0, 1, 1], [], []>} : vector<16x256xbf16>, vector<256x256xbf16>, vector<16x256xf32> -> vector<16x256xf32>
    %14 = vector.extract_strided_slice %0 {offsets = [1, 0], sizes = [1, 256], strides = [1, 1]} : vector<8x256xf32> to vector<1x256xf32>
    %15 = vector.shape_cast %14 : vector<1x256xf32> to vector<256xf32>
    %16 = vector.shape_cast %15 : vector<256xf32> to vector<1x256xf32>
    %17 = vector.broadcast %16 : vector<1x256xf32> to vector<16x256xf32>
    %18 = arith.addf %13, %17 : vector<16x256xf32>
    %cst_9 = arith.constant 0.000000e+00 : f32
    %19 = vector.broadcast %cst_9 : f32 to vector<16x256xf32>
    %20 = arith.maximumf %18, %19 : vector<16x256xf32>
    %21 = arith.truncf %20 : vector<16x256xf32> to vector<16x256xbf16>
    %c0_10 = arith.constant 0 : index
    %c0_11 = arith.constant 0 : index
    %22 = vector.load %arg4[%c0_10, %c0_11] : memref<256x256xbf16, #tpu.memory_space<vmem>>, vector<256x256xbf16>
    %cst_12 = arith.constant dense<0.000000e+00> : vector<16x256xf32>
    %23 = tpu.matmul %21, %22, %cst_12 {dimension_numbers = #tpu.dot_dimension_numbers<[1], [0], [0], [1], [0, 0, 1, 1], [], []>} : vector<16x256xbf16>, vector<256x256xbf16>, vector<16x256xf32> -> vector<16x256xf32>
    %24 = vector.extract_strided_slice %0 {offsets = [2, 0], sizes = [1, 256], strides = [1, 1]} : vector<8x256xf32> to vector<1x256xf32>
    %25 = vector.shape_cast %24 : vector<1x256xf32> to vector<256xf32>
    %26 = vector.shape_cast %25 : vector<256xf32> to vector<1x256xf32>
    %27 = vector.broadcast %26 : vector<1x256xf32> to vector<16x256xf32>
    %28 = arith.addf %23, %27 : vector<16x256xf32>
    %c0_13 = arith.constant 0 : index
    %c0_14 = arith.constant 0 : index
    %29 = vector.load %arg6[%c0_13, %c0_14] : memref<16x256xf32, #tpu.memory_space<vmem>>, vector<16x256xf32>
    tpu.vector_store %arg6[%c0_13, %c0_14], %28 {strides = array<i32>} : memref<16x256xf32, #tpu.memory_space<vmem>>, vector<16x256xf32>,
    return
  }
  func.func @transform_0(%arg0: i32) -> (i32, i32) {
    %c0_i32 = arith.constant 0 : i32
    %c0_i32_0 = arith.constant 0 : i32
    return %arg0, %c0_i32 : i32, i32
  }
  func.func @transform_1(%arg0: i32) -> (i32, i32) {
    %c0_i32 = arith.constant 0 : i32
    %c0_i32_0 = arith.constant 0 : i32
    %c0_i32_1 = arith.constant 0 : i32
    return %c0_i32, %c0_i32_0 : i32, i32
  }
  func.func @transform_2(%arg0: i32) -> (i32, i32) {
    %c0_i32 = arith.constant 0 : i32
    %c0_i32_0 = arith.constant 0 : i32
    %c0_i32_1 = arith.constant 0 : i32
    return %c0_i32, %c0_i32_0 : i32, i32
  }
  func.func @transform_3(%arg0: i32) -> (i32, i32) {
    %c0_i32 = arith.constant 0 : i32
    %c0_i32_0 = arith.constant 0 : i32
    %c0_i32_1 = arith.constant 0 : i32
    return %c0_i32, %c0_i32_0 : i32, i32
  }
  func.func @transform_4(%arg0: i32) -> (i32, i32) {
    %c0_i32 = arith.constant 0 : i32
    %c0_i32_0 = arith.constant 0 : i32
    %c0_i32_1 = arith.constant 0 : i32
    return %c0_i32, %c0_i32_0 : i32, i32
  }
  func.func @transform_5(%arg0: i32) -> (i32, i32) {
    %c0_i32 = arith.constant 0 : i32
    %c0_i32_0 = arith.constant 0 : i32
    return %arg0, %c0_i32 : i32, i32
  }
}

</mosaic_0001>

<bundles_post_ra>
// kernel: mlp_forward.1
= control target key start
LH: loop header
LB: loop body
LE: loop exit
PB: predicated region body
PF: predicated region fallthrough
CT: control target
= control target key end

     0   :  { %10 = vsyncpa [#allocation3], 0  ;;  %s1208_s0 = inlined_call_operand.vmem [shape: bf16[16,256], index: 0, kind: input, shape index: {}]   ;;  %s1209_s1 = inlined_call_operand.hbm [shape: bf16[256,256], index: 1, kind: input, shape index: {}]   ;;  %s1210_s2 = inlined_call_operand.hbm [shape: bf16[256,256], index: 2, kind: input, shape index: {}]   ;;  %s1211_s3 = inlined_call_operand.hbm [shape: bf16[256,256], index: 3, kind: input, shape index: {}]   ;;  %s1212_s4 = inlined_call_operand.vmem [shape: f32[8,256], index: 4, kind: input, shape index: {}]   ;;  %s1213_s5 = inlined_call_operand.vmem [shape: f32[16,256], index: 5, kind: output, shape index: {}]  }
   0x1   :  { %11 = vsyncpa [#allocation5], 0  ;;  %s1140_s18 = smov [#allocation4]   ;;  %s1141_s20 = smov [#allocation2]  }
   0x2   :  { %s31_s19 = sshll.u32 %s1140_s18, 4  ;;  %s19_s21 = sshll.u32 %s1141_s20, 4  ;;  %s32_s19 = int_to_ptr.vmem [resolvable:$true] %s31_s19  ;;  %s20_s21 = int_to_ptr.vmem [resolvable:$true] %s19_s21 }
   0x3   :  { %s1084_s22 = scalar_lea.vmem %s32_s19, 4096  ;;  %p1089_p1 = scmp.lt.s32.totalorder %s32_s19, %s32_s19 }
   0x4   :  { %p1085_p0 = scmp.ne.s32.totalorder %s32_s19, %s1084_s22  ;;  %p1090_p2 = scmp.lt.s32.totalorder %s1084_s22, %s1084_s22 }
   0x6   :  { %p1091_p3 = por %p1090_p2, %p1089_p1 }
   0x8   :  { %p1092_p4 = pnand %p1091_p3, %p1085_p0 }
   0xa   :  { %1095 = shalt.err (!%p1092_p4)
}
   0xb   :  { %s1142_s23 = smov 128   ;;  %s1143_s24 = smov 8  }
   0xc   :  { %37 = dma.hbm_to_vmem [thread:$0]  %s1210_s2, 4096, %s32_s19, [#allocation5], %s1142_s23, %s1142_s23, %s1143_s24  }
   0xd   :  { %s1104_s27 = scalar_lea.vmem %s20_s21, 4096  ;;  %p1109_p6 = scmp.lt.s32.totalorder %s20_s21, %s20_s21 }
   0xe   :  { %p1105_p5 = scmp.ne.s32.totalorder %s20_s21, %s1104_s27  ;;  %p1110_p7 = scmp.lt.s32.totalorder %s1104_s27, %s1104_s27 }
  0x10   :  { %p1111_p8 = por %p1110_p7, %p1109_p6 }
  0x12   :  { %p1112_p9 = pnand %p1111_p8, %p1105_p5 }
  0x14   :  { %1115 = shalt.err (!%p1112_p9)
}
  0x15   :  { %25 = dma.hbm_to_vmem [thread:$0]  %s1209_s1, 4096, %s20_s21, [#allocation3], %s1142_s23, %s1142_s23, %s1143_s24  }
  0x16   :  { %s1144_s30 = smov [#allocation6]  }
  0x17   :  { %s43_s6 = sshll.u32 %s1144_s30, 4  ;;  %s44_s6 = int_to_ptr.vmem [resolvable:$true] %s43_s6 }
  0x18   :  { %s1124_s7 = scalar_lea.vmem %s44_s6, 4096  ;;  %p1129_p11 = scmp.lt.s32.totalorder %s44_s6, %s44_s6 }
  0x19   :  { %p1125_p10 = scmp.ne.s32.totalorder %s44_s6, %s1124_s7  ;;  %p1130_p12 = scmp.lt.s32.totalorder %s1124_s7, %s1124_s7 }
  0x1b   :  { %p1131_p13 = por %p1130_p12, %p1129_p11 }
  0x1d   :  { %p1132_p0 = pnand %p1131_p13, %p1125_p10 }
  0x1f   :  { %1135 = shalt.err (!%p1132_p0)
}
  0x20   :  { %49 = dma.hbm_to_vmem [thread:$0]  %s1211_s3, 4096, %s44_s6, [#allocation5], %s1142_s23, %s1142_s23, %s1143_s24  }
  0x21   :  { %1136 = dma.done.wait [#allocation3], 4096  }
  0x22   :  { %1137 = vsyncadd [#allocation3], 4294963200 }
  0x23   :  { %1138 = dma.done.wait [#allocation5], 8192  }
  0x24   :  { %1139 = vsyncadd [#allocation5], 4294959104  ;;  %v929_v0 = vld [vmem:[#allocation2 + $0x74] ss:$8 sps:$4 sm:$0xff]   ;;  %v931_v1 = vld [vmem:[#allocation2 + $0x70] ss:$8 sps:$4 sm:$0xff]  }
  0x25   :  { %275 = vmatprep.subr.bf16.mxu0 %v929_v0  ;;  %v932_v2 = vld [vmem:[#allocation2 + $0x64] ss:$8 sps:$4 sm:$0xff]   ;;  %v934_v3 = vld [vmem:[#allocation2 + $0x60] ss:$8 sps:$4 sm:$0xff]   ;;  %v935_v4 = vld [vmem:[#allocation2 + $0x54] ss:$8 sps:$4 sm:$0xff]  }
  0x26   :  { %276 = vmatpush1.bf16.msra.mxu0 %v931_v1  ;;  %v937_v5 = vld [vmem:[#allocation2 + $0x50] ss:$8 sps:$4 sm:$0xff]   ;;  %v938_v6 = vld [vmem:[#allocation2 + $0x44] ss:$8 sps:$4 sm:$0xff]   ;;  %v940_v7 = vld [vmem:[#allocation2 + $0x40] ss:$8 sps:$4 sm:$0xff]  }
  0x27   :  { %277 = vmatprep.subr.bf16.mxu0 %v932_v2  ;;  %v941_v8 = vld [vmem:[#allocation2 + $0x34] ss:$8 sps:$4 sm:$0xff]   ;;  %v943_v9 = vld [vmem:[#allocation2 + $0x30] ss:$8 sps:$4 sm:$0xff]   ;;  %v944_v10 = vld [vmem:[#allocation2 + $0x24] ss:$8 sps:$4 sm:$0xff]  }
  0x28   :  { %v946_v11 = vld [vmem:[#allocation2 + $0x20] ss:$8 sps:$4 sm:$0xff]   ;;  %v947_v12 = vld [vmem:[#allocation2 + $0x14] ss:$8 sps:$4 sm:$0xff]   ;;  %v949_v13 = vld [vmem:[#allocation2 + $0x10] ss:$8 sps:$4 sm:$0xff]  }
  0x29   :  { %v950_v14 = vld [vmem:[#allocation2 + $0x4] ss:$8 sps:$4 sm:$0xff]   ;;  %v980_v16 = vld [vmem:[#allocation4 + $0x74] ss:$8 sps:$4 sm:$0xff]   ;;  %v982_v17 = vld [vmem:[#allocation4 + $0x70] ss:$8 sps:$4 sm:$0xff]  }
  0x2a   :  { %278 = vmatpush1.bf16.msra.mxu0 %v934_v3  ;;  %v979_v15 = vld [vmem:[%s1208_s0 + $0x4] ss:$8 sps:$4 sm:$0xff]   ;;  %524 = vmatprep.subr.bf16.mxu1 %v980_v16  ;;  %v985_v19 = vld [vmem:[#allocation4 + $0x60] ss:$8 sps:$4 sm:$0xff]   ;;  %v986_v21 = vld [vmem:[#allocation4 + $0x54] ss:$8 sps:$4 sm:$0xff]  }
  0x2b   :  { %279 = vmatprep.subr.bf16.mxu0 %v935_v4  ;;  %307 = vmatprep.mubr.bf16.mxu0 %v979_v15  ;;  %v983_v18 = vld [vmem:[#allocation4 + $0x64] ss:$8 sps:$4 sm:$0xff]   ;;  %v952_v20 = vld [vmem:[#allocation2] ss:$8 sps:$4 sm:$0xff]   ;;  %v953_v22 = vld [vmem:[#allocation2 + $0xf4] ss:$8 sps:$4 sm:$0xff]  }
  0x2c   :  { %525 = vmatpush1.bf16.msra.mxu1 %v982_v17  ;;  %v988_v23 = vld [vmem:[#allocation4 + $0x50] ss:$8 sps:$4 sm:$0xff]   ;;  %v989_v25 = vld [vmem:[#allocation4 + $0x44] ss:$8 sps:$4 sm:$0xff]   ;;  %v991_v27 = vld [vmem:[#allocation4 + $0x40] ss:$8 sps:$4 sm:$0xff]  }
  0x2d   :  { %526 = vmatprep.subr.bf16.mxu1 %v983_v18  ;;  %v955_v24 = vld [vmem:[#allocation2 + $0xf0] ss:$8 sps:$4 sm:$0xff]   ;;  %v956_v26 = vld [vmem:[#allocation2 + $0xe4] ss:$8 sps:$4 sm:$0xff]   ;;  %v958_v28 = vld [vmem:[#allocation2 + $0xe0] ss:$8 sps:$4 sm:$0xff]  }
  0x2e   :  { %280 = vmatpush1.bf16.msra.mxu0 %v937_v5  ;;  %v992_v29 = vld [vmem:[#allocation4 + $0x34] ss:$8 sps:$4 sm:$0xff]   ;;  %v961_v31 = vld [vmem:[#allocation2 + $0xd0] ss:$8 sps:$4 sm:$0xff]   ;;  %v962_v33 = vld [vmem:[#allocation2 + $0xc4] ss:$8 sps:$4 sm:$0xff]  }
  0x2f   :  { %281 = vmatprep.subr.bf16.mxu0 %v938_v6  ;;  %v959_v30 = vld [vmem:[#allocation2 + $0xd4] ss:$8 sps:$4 sm:$0xff]   ;;  %v994_v32 = vld [vmem:[#allocation4 + $0x30] ss:$8 sps:$4 sm:$0xff]   ;;  %v995_v34 = vld [vmem:[#allocation4 + $0x24] ss:$8 sps:$4 sm:$0xff]  }
  0x30   :  { %527 = vmatpush1.bf16.msra.mxu1 %v985_v19  ;;  %v997_v35 = vld [vmem:[#allocation4 + $0x20] ss:$8 sps:$4 sm:$0xff]   ;;  %v998_v37 = vld [vmem:[#allocation4 + $0x14] ss:$8 sps:$4 sm:$0xff]   ;;  %v1000_v39 = vld [vmem:[#allocation4 + $0x10] ss:$8 sps:$4 sm:$0xff]  }
  0x31   :  { %528 = vmatprep.subr.bf16.mxu1 %v986_v21  ;;  %v964_v36 = vld [vmem:[#allocation2 + $0xc0] ss:$8 sps:$4 sm:$0xff]   ;;  %v965_v38 = vld [vmem:[#allocation2 + $0xb4] ss:$8 sps:$4 sm:$0xff]   ;;  %v967_v40 = vld [vmem:[#allocation2 + $0xb0] ss:$8 sps:$4 sm:$0xff]  }
  0x32   :  { %282 = vmatpush1.bf16.msra.mxu0 %v940_v7  ;;  %v1001_v41 = vld [vmem:[#allocation4 + $0x4] ss:$8 sps:$4 sm:$0xff]   ;;  %v1003_v43 = vld [vmem:[#allocation4] ss:$8 sps:$4 sm:$0xff]   ;;  %v1004_v45 = vld [vmem:[#allocation4 + $0xf4] ss:$8 sps:$4 sm:$0xff]  }
  0x33   :  { %283 = vmatprep.subr.bf16.mxu0 %v941_v8  ;;  %v968_v42 = vld [vmem:[#allocation2 + $0xa4] ss:$8 sps:$4 sm:$0xff]   ;;  %v970_v44 = vld [vmem:[#allocation2 + $0xa0] ss:$8 sps:$4 sm:$0xff]   ;;  %v971_v46 = vld [vmem:[#allocation2 + $0x94] ss:$8 sps:$4 sm:$0xff]  }
  0x34   :  { %529 = vmatpush1.bf16.msra.mxu1 %v988_v23  ;;  %v1006_v47 = vld [vmem:[#allocation4 + $0xf0] ss:$8 sps:$4 sm:$0xff]   ;;  %v1007_v49 = vld [vmem:[#allocation4 + $0xe4] ss:$8 sps:$4 sm:$0xff]   ;;  %v1009_v51 = vld [vmem:[#allocation4 + $0xe0] ss:$8 sps:$4 sm:$0xff]  }
  0x35   :  { %530 = vmatprep.subr.bf16.mxu1 %v989_v25  ;;  %v973_v48 = vld [vmem:[#allocation2 + $0x90] ss:$8 sps:$4 sm:$0xff]   ;;  %v974_v50 = vld [vmem:[#allocation2 + $0x84] ss:$8 sps:$4 sm:$0xff]   ;;  %v976_v52 = vld [vmem:[#allocation2 + $0x80] ss:$8 sps:$4 sm:$0xff]  }
  0x36   :  { %284 = vmatpush1.bf16.msra.mxu0 %v943_v9  ;;  %v1010_v53 = vld [vmem:[#allocation4 + $0xd4] ss:$8 sps:$4 sm:$0xff]   ;;  %v977_v54 = vld [vmem:[%s1208_s0] ss:$8 sps:$4 sm:$0xff]   ;;  %v1012_v55 = vld [vmem:[#allocation4 + $0xd0] ss:$8 sps:$4 sm:$0xff]  }
  0x37   :  { %285 = vmatprep.subr.bf16.mxu0 %v944_v10  ;;  %v1013_v56 = vld [vmem:[#allocation4 + $0xc4] ss:$8 sps:$4 sm:$0xff]   ;;  %v1015_v57 = vld [vmem:[#allocation4 + $0xc0] ss:$8 sps:$4 sm:$0xff]   ;;  %v1016_v58 = vld [vmem:[#allocation4 + $0xb4] ss:$8 sps:$4 sm:$0xff]  }
  0x38   :  { %531 = vmatpush1.bf16.msra.mxu1 %v991_v27  ;;  %v1018_v59 = vld [vmem:[#allocation4 + $0xb0] ss:$8 sps:$4 sm:$0xff]   ;;  %v1019_v60 = vld [vmem:[#allocation4 + $0xa4] ss:$8 sps:$4 sm:$0xff]   ;;  %v1021_v61 = vld [vmem:[#allocation4 + $0xa0] ss:$8 sps:$4 sm:$0xff]  }
  0x39   :  { %532 = vmatprep.subr.bf16.mxu1 %v992_v29  ;;  %v1022_v62 = vld [vmem:[#allocation4 + $0x94] ss:$8 sps:$4 sm:$0xff]   ;;  %v1024_v63 = vld [vmem:[#allocation4 + $0x90] ss:$8 sps:$4 sm:$0xff]   ;;  %v1025_v0 = vld [vmem:[#allocation4 + $0x84] ss:$8 sps:$4 sm:$0xff]  }
  0x3a   :  { %286 = vmatpush1.bf16.msra.mxu0 %v946_v11  ;;  %v1027_v1 = vld [vmem:[#allocation4 + $0x80] ss:$8 sps:$4 sm:$0xff]   ;;  %v1028_v2 = vld [vmem:[#allocation6 + $0x70] ss:$8 sps:$4 sm:$0xff]   ;;  %v1030_v3 = vld [vmem:[#allocation6 + $0x74] ss:$8 sps:$4 sm:$0xff]  }
  0x3b   :  { %287 = vmatprep.subr.bf16.mxu0 %v947_v12  ;;  %v1033_v4 = vld [vmem:[#allocation6 + $0x64] ss:$8 sps:$4 sm:$0xff]   ;;  %v1031_v5 = vld [vmem:[#allocation6 + $0x60] ss:$8 sps:$4 sm:$0xff]   ;;  %v1036_v6 = vld [vmem:[#allocation6 + $0x54] ss:$8 sps:$4 sm:$0xff]  }
  0x3c   :  { %533 = vmatpush1.bf16.msra.mxu1 %v994_v32  ;;  %v1034_v7 = vld [vmem:[#allocation6 + $0x50] ss:$8 sps:$4 sm:$0xff]   ;;  %v1039_v8 = vld [vmem:[#allocation6 + $0x44] ss:$8 sps:$4 sm:$0xff]   ;;  %v1037_v9 = vld [vmem:[#allocation6 + $0x40] ss:$8 sps:$4 sm:$0xff]  }
  0x3d   :  { %534 = vmatprep.subr.bf16.mxu1 %v995_v34  ;;  %v1042_v10 = vld [vmem:[#allocation6 + $0x34] ss:$8 sps:$4 sm:$0xff]   ;;  %v1040_v11 = vld [vmem:[#allocation6 + $0x30] ss:$8 sps:$4 sm:$0xff]   ;;  %v1045_v12 = vld [vmem:[#allocation6 + $0x24] ss:$8 sps:$4 sm:$0xff]  }
  0x3e   :  { %288 = vmatpush1.bf16.msra.mxu0 %v949_v13  ;;  %v1043_v13 = vld [vmem:[#allocation6 + $0x20] ss:$8 sps:$4 sm:$0xff]   ;;  %v1046_v15 = vld [vmem:[#allocation6 + $0x10] ss:$8 sps:$4 sm:$0xff]   ;;  %v1051_v16 = vld [vmem:[#allocation6 + $0x4] ss:$8 sps:$4 sm:$0xff]  }
  0x3f   :  { %289 = vmatprep.subr.bf16.mxu0 %v950_v14  ;;  %v1048_v14 = vld [vmem:[#allocation6 + $0x14] ss:$8 sps:$4 sm:$0xff]   ;;  %v1049_v17 = vld [vmem:[#allocation6] ss:$8 sps:$4 sm:$0xff]   ;;  %v1052_v19 = vld [vmem:[#allocation6 + $0xf0] ss:$8 sps:$4 sm:$0xff]  }
  0x40   :  { %535 = vmatpush1.bf16.msra.mxu1 %v997_v35  ;;  %v1054_v18 = vld [vmem:[#allocation6 + $0xf4] ss:$8 sps:$4 sm:$0xff]   ;;  %v1055_v21 = vld [vmem:[#allocation6 + $0xe0] ss:$8 sps:$4 sm:$0xff]   ;;  %v1058_v23 = vld [vmem:[#allocation6 + $0xd0] ss:$8 sps:$4 sm:$0xff]  }
  0x41   :  { %536 = vmatprep.subr.bf16.mxu1 %v998_v37  ;;  %v1061_v25 = vld [vmem:[#allocation6 + $0xc0] ss:$8 sps:$4 sm:$0xff]   ;;  %v1064_v27 = vld [vmem:[#allocation6 + $0xb0] ss:$8 sps:$4 sm:$0xff]  }
  0x42   :  { %290 = vmatpush1.bf16.msra.mxu0 %v952_v20  ;;  %v1057_v20 = vld [vmem:[#allocation6 + $0xe4] ss:$8 sps:$4 sm:$0xff]  }
  0x43   :  { %291 = vmatprep.subr.bf16.mxu0 %v953_v22  ;;  %v1060_v22 = vld [vmem:[#allocation6 + $0xd4] ss:$8 sps:$4 sm:$0xff]   ;;  %v61_v32 = vld [vmem:[%s1212_s4] sm:$0xff] }
  0x44   :  { %537 = vmatpush1.bf16.msra.mxu1 %v1000_v39 }
  0x45   :  { %538 = vmatprep.subr.bf16.mxu1 %v1001_v41 }
  0x46   :  { %292 = vmatpush2.bf16.msra.mxu0 %v955_v24  ;;  %v1063_v24 = vld [vmem:[#allocation6 + $0xc4] ss:$8 sps:$4 sm:$0xff]  }
  0x47   :  { %293 = vmatprep.subr.bf16.mxu0 %v956_v26  ;;  %v1066_v26 = vld [vmem:[#allocation6 + $0xb4] ss:$8 sps:$4 sm:$0xff]  }
  0x48   :  { %539 = vmatpush1.bf16.msra.mxu1 %v1003_v43 }
  0x49   :  { %540 = vmatprep.subr.bf16.mxu1 %v1004_v45 }
  0x4a   :  { %294 = vmatpush2.bf16.msra.mxu0 %v958_v28  ;;  %v97_v28 = vlaneseq }
  0x4b   :  { %295 = vmatprep.subr.bf16.mxu0 %v959_v30 }
  0x4c   :  { %541 = vmatpush2.bf16.msra.mxu1 %v1006_v47  ;;  %v98_v29 = vshrl.u32 %v97_v28, 7 }
  0x4d   :  { %542 = vmatprep.subr.bf16.mxu1 %v1007_v49  ;;  %v1069_v49 = vld [vmem:[#allocation6 + $0xa4] ss:$8 sps:$4 sm:$0xff]  }
  0x4e   :  { %296 = vmatpush2.bf16.msra.mxu0 %v961_v31  ;;  %v99_v30 = vsub.s32 0, %v98_v29  ;;  %v62_v31 = vld [vmem:[%s1212_s4 + $0x8] sm:$0xff] }
  0x4f   :  { %297 = vmatprep.subr.bf16.mxu0 %v962_v33 }
  0x50   :  { %543 = vmatpush2.bf16.msra.mxu1 %v1009_v51  ;;  %v104_v34 = vrot.slane %v62_v31, %v99_v30  ;;  %v100_v35 = vrot.slane %v61_v32, %v99_v30  ;;  %v1072_v51 = vld [vmem:[#allocation6 + $0x94] ss:$8 sps:$4 sm:$0xff]  }
  0x51   :  { %544 = vmatprep.subr.bf16.mxu1 %v1010_v53  ;;  %v1075_v53 = vld [vmem:[#allocation6 + $0x84] ss:$8 sps:$4 sm:$0xff]  }
  0x52   :  { %298 = vmatpush2.bf16.msra.mxu0 %v964_v36 }
  0x53   :  { %299 = vmatprep.subr.bf16.mxu0 %v965_v38 }
  0x54   :  { %545 = vmatpush2.bf16.msra.mxu1 %v1012_v55  ;;  %v358_v55 = vsub.s32 1, %v98_v29 }
  0x55   :  { %546 = vmatprep.subr.bf16.mxu1 %v1013_v56 }
  0x56   :  { %300 = vmatpush2.bf16.msra.mxu0 %v967_v40 }
  0x57   :  { %301 = vmatprep.subr.bf16.mxu0 %v968_v42 }
  0x58   :  { %547 = vmatpush2.bf16.msra.mxu1 %v1015_v57  ;;  %v363_v57 = vrot.slane %v62_v31, %v358_v55 }
  0x59   :  { %548 = vmatprep.subr.bf16.mxu1 %v1016_v58  ;;  %v359_v58 = vrot.slane %v61_v32, %v358_v55 }
  0x5a   :  { %302 = vmatpush2.bf16.msra.mxu0 %v970_v44 }
  0x5b   :  { %303 = vmatprep.subr.bf16.mxu0 %v971_v46 }
  0x5c   :  { %549 = vmatpush2.bf16.msra.mxu1 %v1018_v59 }
  0x5d   :  { %550 = vmatprep.subr.bf16.mxu1 %v1019_v60 }
  0x5e   :  { %304 = vmatpush2.bf16.msra.mxu0 %v973_v48 }
  0x5f   :  { %305 = vmatprep.subr.bf16.mxu0 %v974_v50  ;;  %v1067_v50 = vld [vmem:[#allocation6 + $0xa0] ss:$8 sps:$4 sm:$0xff]  }
  0x60   :  { %551 = vmatpush2.bf16.msra.mxu1 %v1021_v61 }
  0x61   :  { %552 = vmatprep.subr.bf16.mxu1 %v1022_v62 }
  0x62   :  { %306 = vmatpush2.bf16.msra.mxu0 %v976_v52  ;;  %v1070_v52 = vld [vmem:[#allocation6 + $0x90] ss:$8 sps:$4 sm:$0xff]  }
  0x63   :  { %773 = vmatprep.subr.bf16.mxu0 %v1030_v3 }
  0x64   :  { %553 = vmatpush2.bf16.msra.mxu1 %v1024_v63 }
  0x65   :  { %308 = vmatmul.mubr.bf16.vlgmr.msra.gmra.mxu0 %v977_v54  ;;  %554 = vmatprep.subr.bf16.mxu1 %v1025_v0  ;;  %v1073_v54 = vld [vmem:[#allocation6 + $0x80] ss:$8 sps:$4 sm:$0xff]  }
  0x66   :  { %774 = vmatpush1.bf16.msra.mxu0 %v1028_v2 }
  0x67   :  { %775 = vmatprep.subr.bf16.mxu0 %v1033_v4 }
  0x68   :  { %555 = vmatpush2.bf16.msra.mxu1 %v1027_v1 }
  0x6a   :  { %776 = vmatpush1.bf16.msra.mxu0 %v1031_v5 }
  0x6b   :  { %777 = vmatprep.subr.bf16.mxu0 %v1036_v6 }
  0x6e   :  { %778 = vmatpush1.bf16.msra.mxu0 %v1034_v7 }
  0x6f   :  { %779 = vmatprep.subr.bf16.mxu0 %v1039_v8  ;;  %v607_v8 = vsub.s32 2, %v98_v29 }
  0x72   :  { %780 = vmatpush1.bf16.msra.mxu0 %v1037_v9  ;;  %v608_v9 = vrot.slane %v61_v32, %v607_v8 }
  0x73   :  { %781 = vmatprep.subr.bf16.mxu0 %v1042_v10  ;;  %v612_v10 = vrot.slane %v62_v31, %v607_v8 }
  0x76   :  { %782 = vmatpush1.bf16.msra.mxu0 %v1040_v11 }
  0x77   :  { %783 = vmatprep.subr.bf16.mxu0 %v1045_v12 }
  0x7a   :  { %784 = vmatpush1.bf16.msra.mxu0 %v1043_v13 }
  0x7b   :  { %785 = vmatprep.subr.bf16.mxu0 %v1048_v14 }
  0x7e   :  { %786 = vmatpush1.bf16.msra.mxu0 %v1046_v15 }
  0x7f   :  { %787 = vmatprep.subr.bf16.mxu0 %v1051_v16 }
  0x82   :  { %788 = vmatpush1.bf16.msra.mxu0 %v1049_v17 }
  0x83   :  { %789 = vmatprep.subr.bf16.mxu0 %v1054_v18 }
  0x86   :  { %790 = vmatpush2.bf16.msra.mxu0 %v1052_v19 }
  0x87   :  { %791 = vmatprep.subr.bf16.mxu0 %v1057_v20 }
  0x8a   :  { %792 = vmatpush2.bf16.msra.mxu0 %v1055_v21 }
  0x8b   :  { %793 = vmatprep.subr.bf16.mxu0 %v1060_v22 }
  0x8e   :  { %794 = vmatpush2.bf16.msra.mxu0 %v1058_v23 }
  0x8f   :  { %795 = vmatprep.subr.bf16.mxu0 %v1063_v24 }
  0x92   :  { %796 = vmatpush2.bf16.msra.mxu0 %v1061_v25 }
  0x93   :  { %797 = vmatprep.subr.bf16.mxu0 %v1066_v26 }
  0x96   :  { %798 = vmatpush2.bf16.msra.mxu0 %v1064_v27 }
  0x97   :  { %799 = vmatprep.subr.bf16.mxu0 %v1069_v49 }
  0x9a   :  { %800 = vmatpush2.bf16.msra.mxu0 %v1067_v50 }
  0x9b   :  { %801 = vmatprep.subr.bf16.mxu0 %v1072_v51 }
  0x9e   :  { %802 = vmatpush2.bf16.msra.mxu0 %v1070_v52 }
  0x9f   :  { %803 = vmatprep.subr.bf16.mxu0 %v1075_v53 }
  0xa2   :  { %804 = vmatpush2.bf16.msra.mxu0 %v1073_v54 }
 0x125   :  { %v309_v33 = vpop.f32.mrf.mxu0 }
 0x126   :  { %v310_v40 = vadd.f32 %v309_v33, %v100_v35 }
 0x127   :  { %v311_v36 = vpop.f32.mrf.mxu0 }
 0x128   :  { %v312_v38 = vadd.f32 %v311_v36, %v104_v34  ;;  %v318_v46 = vmax.f32 %v310_v40, 0.0 }
 0x129   :  { %v313_v37 = vpop.f32.mrf.mxu0 }
 0x12a   :  { %v314_v39 = vadd.f32 %v313_v37, %v100_v35  ;;  %v319_v44 = vmax.f32 %v312_v38, 0.0 }
 0x12b   :  { %v315_v41 = vpop.f32.mrf.mxu0 }
 0x12c   :  { %v316_v42 = vadd.f32 %v315_v41, %v104_v34  ;;  %v320_v43 = vmax.f32 %v314_v39, 0.0 }
 0x12e   :  { %v321_v45 = vmax.f32 %v316_v42, 0.0  ;;  %v322_v48 = vpack.c.bf16 %v320_v43, %v318_v46 }
 0x130   :  { %v323_v47 = vpack.c.bf16 %v321_v45, %v319_v44 }
 0x132   :  { %556 = vmatprep.mubr.bf16.mxu1 %v323_v47 }
 0x133   :  { %557 = vmatmul.mubr.bf16.vlgmr.msra.gmra.mxu1 %v322_v48 }
 0x1f3   :  { %v558_v56 = vpop.f32.mrf.mxu1 }
 0x1f4   :  { %v559_v63 = vadd.f32 %v558_v56, %v359_v58 }
 0x1f5   :  { %v560_v59 = vpop.f32.mrf.mxu1 }
 0x1f6   :  { %v561_v61 = vadd.f32 %v560_v59, %v363_v57  ;;  %v567_v5 = vmax.f32 %v559_v63, 0.0 }
 0x1f7   :  { %v562_v60 = vpop.f32.mrf.mxu1 }
 0x1f8   :  { %v563_v62 = vadd.f32 %v562_v60, %v359_v58  ;;  %v568_v3 = vmax.f32 %v561_v61, 0.0 }
 0x1f9   :  { %v564_v0 = vpop.f32.mrf.mxu1 }
 0x1fa   :  { %v565_v1 = vadd.f32 %v564_v0, %v363_v57  ;;  %v569_v2 = vmax.f32 %v563_v62, 0.0 }
 0x1fc   :  { %v570_v4 = vmax.f32 %v565_v1, 0.0  ;;  %v571_v7 = vpack.c.bf16 %v569_v2, %v567_v5 }
 0x1fe   :  { %v572_v6 = vpack.c.bf16 %v570_v4, %v568_v3 }
 0x200   :  { %805 = vmatprep.mubr.bf16.mxu0 %v572_v6 }
 0x201   :  { %806 = vmatmul.mubr.bf16.vlgmr.msra.gmra.mxu0 %v571_v7 }
 0x2c1   :  { %v807_v11 = vpop.f32.mrf.mxu0 }
 0x2c2   :  { %v808_v12 = vadd.f32 %v807_v11, %v608_v9 }
 0x2c3   :  { %v809_v13 = vpop.f32.mrf.mxu0 }
 0x2c4   :  { %816 = vst [vmem:[%s1213_s5] sm:$0xff] %v808_v12  ;;  %v810_v14 = vadd.f32 %v809_v13, %v612_v10 }
 0x2c5   :  { %v811_v15 = vpop.f32.mrf.mxu0 }
 0x2c6   :  { %817 = vst [vmem:[%s1213_s5 + $0x8] sm:$0xff] %v810_v14  ;;  %v812_v16 = vadd.f32 %v811_v15, %v608_v9 }
 0x2c7   :  { %v813_v17 = vpop.f32.mrf.mxu0 }
 0x2c8   :  { %818 = vst [vmem:[%s1213_s5 + $0x10] sm:$0xff] %v812_v16  ;;  %v814_v18 = vadd.f32 %v813_v17, %v612_v10 }
 0x2ca   :  { %819 = vst [vmem:[%s1213_s5 + $0x18] sm:$0xff] %v814_v18 }
 0x2cb   :  { %824 = vsyncpa [#allocation3], 1 }
 0x2cc   :  { %825 = vsyncpa [#allocation5], 1 }

</bundles_post_ra>
